<compile_context>
chip_gen: v7x
topology: tpu7x:2x2x1
jax: 0.10.0
libtpu: 0.0.40
codegen_flags: <defaults>
</compile_context>

<pallas_src>
import math
import functools

import jax
import jax.numpy as jnp
from jax import lax
from jax.experimental import pallas as pl
from jax.experimental.pallas import tpu as pltpu

HIDDEN = 128                      # hidden width of both MLP layers
LANES = 128                       # TPU vector-lane width
_VMEM_LIMIT = 32 * 1024 * 1024    # scoped VMEM target: safe on v5e/v6e (128 MiB) and v7x (64 MiB)


def _round_up(x, m):
    return pl.cdiv(x, m) * m


def _num_tensorcores():
    """TensorCores per chip: v5e/v6e -> 1 (grid is a sequential loop there)."""
    try:
        kind = jax.devices()[0].device_kind.lower()
    except Exception:
        return 1
    if "lite" in kind or "v5e" in kind or "v6e" in kind or "v6" in kind:
        return 1
    if "v7" in kind or "v4" in kind or "v5p" in kind:
        return 2
    return 1


def _const_spec(shape):
    """BlockSpec for a grid-invariant operand (weights / biases).

    Single-buffered: the block never changes across grid steps, so default
    double-buffering only reserves 2x VMEM for nothing.  Falls back to a plain
    spec if this JAX build does not expose pipeline_mode / Buffered.
    """
    index_map = lambda i: (0, 0)
    try:
        return pl.BlockSpec(shape, index_map, pipeline_mode=pl.Buffered(1))
    except (TypeError, AttributeError):
        return pl.BlockSpec(shape, index_map)


def _gelu(x, approximate):
    if approximate:
        # tanh form: the transcendental goes through the EUP slot (cheap).
        return jax.nn.gelu(x, approximate=True)
    # exact erf form == torch.nn.GELU() default (f32).
    return 0.5 * x * (1.0 + lax.erf(x * (1.0 / math.sqrt(2.0))))


def value_network_kernel(x_ref, w1_ref, b1_ref, w2_ref, b2_ref, w3_ref, b3_ref,
                         o_ref, *, approximate):
    # Feed the MXU in the weights' native dtype (bf16-friendly); accumulate in
    # f32 via preferred_element_type.  GELU is evaluated in f32.
    x = x_ref[...].astype(w1_ref.dtype)                           # (TB, F)

    # ff1 + GELU
    h = jnp.dot(x, w1_ref[...], preferred_element_type=jnp.float32)
    h = _gelu(h + b1_ref[...].astype(jnp.float32), approximate)   # (TB, 128) f32
    h = h.astype(w2_ref.dtype)

    # ff2 + GELU
    h = jnp.dot(h, w2_ref[...], preferred_element_type=jnp.float32)
    h = _gelu(h + b2_ref[...].astype(jnp.float32), approximate)   # (TB, 128) f32
    h = h.astype(w3_ref.dtype)

    # value head (lane-padded to a multiple of 128 -> unmasked dense stores)
    v = jnp.dot(h, w3_ref[...], preferred_element_type=jnp.float32)
    v = v + b3_ref[...].astype(jnp.float32)                       # (TB, OUT_P)
    o_ref[...] = v.astype(o_ref.dtype)


@functools.partial(jax.jit,
                   static_argnames=("block_b", "approximate_gelu", "num_cores"))
def value_network(state, w1, b1, w2, b2, w3, b3, *, block_b=1024,
                  approximate_gelu=False, num_cores=None):
    B, F = state.shape
    out_features = w3.shape[1]
    out_p = _round_up(out_features, LANES)     # lane-dense output width (>=128)

    if num_cores is None:
        num_cores = _num_tensorcores()

    in_bytes = jnp.dtype(state.dtype).itemsize
    w_bytes = jnp.dtype(w1.dtype).itemsize

    # Lane-dense output: pad head weights/bias to 128-lane multiples (tiny).
    if out_p != out_features:
        w3 = jnp.pad(w3, ((0, 0), (0, out_p - out_features)))
        b3 = jnp.pad(b3, (0, out_p - out_features))

    # Biases kept 2D (1, H) so they tile cleanly into VMEM.
    b1 = b1.reshape(1, HIDDEN)
    b2 = b2.reshape(1, HIDDEN)
    b3 = b3.reshape(1, out_p)

    # ---- batch-tile selection ----------------------------------------------
    sub = 8 * max(1, 4 // in_bytes)            # sublane granularity: 8 f32 / 16 bf16
    b_pad = _round_up(B, sub)
    bb = min(block_b, b_pad)

    # Explicit VMEM budget: input/output tiles are double-buffered; weights &
    # biases are single-buffered (constant index_map + pl.Buffered(1)).
    weight_bytes = ((F * HIDDEN + HIDDEN * HIDDEN + HIDDEN * out_p) * w_bytes
                    + (2 * HIDDEN + out_p) * w_bytes)
    io_budget = int(_VMEM_LIMIT * 0.75) - weight_bytes
    per_row = 2 * F * in_bytes + 2 * out_p * in_bytes
    row_cap = max(sub, (io_budget // per_row) // sub * sub)
    bb = max(sub, min(bb, row_cap))
    # TODO(synk): for very large F (W1 alone near the VMEM limit) add an
    # "arbitrary" K grid axis with an f32 accumulator instead of holding all
    # of W1 resident.

    # Split only on multi-TensorCore chips (both cores need >=2 parallel grid
    # steps); round the halved tile to a multiple of 256 to keep MXU passes
    # full.  On single-TC chips keep the biggest tile (fewer pipeline steps).
    if num_cores >= 2 and b_pad >= 2 * 256:
        bb = min(bb, _round_up(pl.cdiv(b_pad, num_cores), 256))
    bb = max(sub, _round_up(bb, sub))

    # No jnp.pad of the batch: ragged last block (padded reads, OOB writes
    # dropped) — rows are independent so padding rows never affect valid rows.
    grid = (pl.cdiv(B, bb),)

    cost = pl.CostEstimate(
        flops=2 * B * (F * HIDDEN + HIDDEN * HIDDEN + HIDDEN * out_p),
        transcendentals=2 * B * HIDDEN,
        bytes_accessed=B * F * in_bytes + weight_bytes + B * out_p * in_bytes,
    )

    out = pl.pallas_call(
        functools.partial(value_network_kernel, approximate=approximate_gelu),
        out_shape=jax.ShapeDtypeStruct((B, out_p), state.dtype),
        grid_spec=pltpu.PrefetchScalarGridSpec(
            num_scalar_prefetch=0,
            grid=grid,
            in_specs=[
                pl.BlockSpec((bb, F), lambda i: (i, 0)),    # state tile (double-buffered)
                _const_spec((F, HIDDEN)),                   # W1
                _const_spec((1, HIDDEN)),                   # b1
                _const_spec((HIDDEN, HIDDEN)),              # W2
                _const_spec((1, HIDDEN)),                   # b2
                _const_spec((HIDDEN, out_p)),               # W3 (lane-padded)
                _const_spec((1, out_p)),                    # b3 (lane-padded)
            ],
            out_specs=pl.BlockSpec((bb, out_p), lambda i: (i, 0)),
        ),
        compiler_params=pltpu.CompilerParams(
            dimension_semantics=("parallel",),
            vmem_limit_bytes=_VMEM_LIMIT),
        cost_estimate=cost,
    )(state, w1, b1, w2, b2, w3, b3)

    # Drop the lane padding of the value head (tiny slice: (B,out_p)->(B,out)).
    return out[:, :out_features]


def init_params(key, in_features, out_features=1, dtype=jnp.float32):
    """Kaiming-uniform-ish init matching torch.nn.Linear shapes, stored (in,out)."""
    def linear(key, fan_in, fan_out):
        k_w, k_b = jax.random.split(key)
        bound = 1.0 / math.sqrt(fan_in)
        w = jax.random.uniform(k_w, (fan_in, fan_out), dtype, -bound, bound)
        b = jax.random.uniform(k_b, (fan_out,), dtype, -bound, bound)
        return w, b

    k1, k2, k3 = jax.random.split(key, 3)
    w1, b1 = linear(k1, in_features, HIDDEN)
    w2, b2 = linear(k2, HIDDEN, HIDDEN)
    w3, b3 = linear(k3, HIDDEN, out_features)
    return w1, b1, w2, b2, w3, b3


def value_network_ref(state, w1, b1, w2, b2, w3, b3, approximate=False):
    f32 = jnp.float32
    h = jax.nn.gelu(state.astype(f32) @ w1.astype(f32) + b1.astype(f32),
                    approximate=approximate)
    h = jax.nn.gelu(h @ w2.astype(f32) + b2.astype(f32), approximate=approximate)
    return h @ w3.astype(f32) + b3.astype(f32)


if __name__ == "__main__":
    key = jax.random.PRNGKey(0)
    k_x1, k_x2, k_p = jax.random.split(key, 3)

    B, F = 8, 32
    state = jax.random.normal(k_x1, (B, F), jnp.float32)
    params = init_params(k_p, F, out_features=1)

    # 1) Exact-erf parity with torch.nn.GELU(), tiny batch.
    value = jax.block_until_ready(value_network(state, *params))
    ref = value_network_ref(state, *params)
    assert value.shape == (B, 1)
    assert jnp.allclose(value, ref, atol=1e-5, rtol=1e-5), (
        f"erf/tiny mismatch: max abs err {jnp.max(jnp.abs(value - ref))}")

    # 2) Non-divisible batch handled by the ragged last block (no jnp.pad copy).
    B2 = 300
    state2 = jax.random.normal(k_x2, (B2, F), jnp.float32)
    value2 = jax.block_until_ready(value_network(state2, *params))
    ref2 = value_network_ref(state2, *params)
    assert value2.shape == (B2, 1)
    assert jnp.allclose(value2, ref2, atol=1e-5, rtol=1e-5), (
        f"erf/ragged mismatch: max abs err {jnp.max(jnp.abs(value2 - ref2))}")

    # 3) Opt-in fast path: tanh-GELU routes the transcendental through the EUP.
    value3 = jax.block_until_ready(
        value_network(state2, *params, approximate_gelu=True))
    ref3 = value_network_ref(state2, *params, approximate=True)
    assert jnp.allclose(value3, ref3, atol=1e-5, rtol=1e-5), (
        f"tanh mismatch: max abs err {jnp.max(jnp.abs(value3 - ref3))}")

    # 4) Opt-in bf16 weights/activations (fast MXU path, halved weight traffic).
    params_bf16 = jax.tree_util.tree_map(lambda p: p.astype(jnp.bfloat16), params)
    state_bf16 = state2.astype(jnp.bfloat16)
    value4 = jax.block_until_ready(value_network(state_bf16, *params_bf16))
    v4 = value4.astype(jnp.float32)
    assert jnp.allclose(v4, ref2, atol=5e-2, rtol=5e-2), (
        f"bf16 mismatch: max abs err {jnp.max(jnp.abs(v4 - ref2))}")

    print("KERNEL_OK")
</pallas_src>

<mosaic_0001>
module attributes {stable_mosaic.version = 11 : i64} {
  func.func @value_network_kernel(%arg0: i32, %arg1: memref<8x32xf32, #tpu.memory_space<vmem>>, %arg2: memref<32x128xf32, #tpu.memory_space<vmem>>, %arg3: memref<1x128xf32, #tpu.memory_space<vmem>>, %arg4: memref<128x128xf32, #tpu.memory_space<vmem>>, %arg5: memref<1x128xf32, #tpu.memory_space<vmem>>, %arg6: memref<128x128xf32, #tpu.memory_space<vmem>>, %arg7: memref<1x128xf32, #tpu.memory_space<vmem>>, %arg8: memref<8x128xf32, #tpu.memory_space<vmem>>) attributes {dimension_semantics = [#tpu.dimension_semantics<parallel>], iteration_bounds = array<i64: 1>, scalar_prefetch = 0 : i64, scratch_operands = 0 : i64, tpu.core_type = #tpu.core_type<tc>, window_params = [{transform_indices = @transform_0, window_bounds = array<i64: 8, 32>}, {pipeline_mode = #tpu.pipeline_mode<synchronous>, transform_indices = @transform_1, window_bounds = array<i64: 32, 128>}, {pipeline_mode = #tpu.pipeline_mode<synchronous>, transform_indices = @transform_2, window_bounds = array<i64: 1, 128>}, {pipeline_mode = #tpu.pipeline_mode<synchronous>, transform_indices = @transform_3, window_bounds = array<i64: 128, 128>}, {pipeline_mode = #tpu.pipeline_mode<synchronous>, transform_indices = @transform_4, window_bounds = array<i64: 1, 128>}, {pipeline_mode = #tpu.pipeline_mode<synchronous>, transform_indices = @transform_5, window_bounds = array<i64: 128, 128>}, {pipeline_mode = #tpu.pipeline_mode<synchronous>, transform_indices = @transform_6, window_bounds = array<i64: 1, 128>}, {transform_indices = @transform_7, window_bounds = array<i64: 8, 128>}]} {
    %c0 = arith.constant 0 : index
    %c0_0 = arith.constant 0 : index
    %0 = vector.load %arg1[%c0, %c0_0] : memref<8x32xf32, #tpu.memory_space<vmem>>, vector<8x32xf32>
    %c0_1 = arith.constant 0 : index
    %c0_2 = arith.constant 0 : index
    %1 = vector.load %arg2[%c0_1, %c0_2] : memref<32x128xf32, #tpu.memory_space<vmem>>, vector<32x128xf32>
    %cst = arith.constant dense<0.000000e+00> : vector<8x128xf32>
    %2 = tpu.matmul %0, %1, %cst {dimension_numbers = #tpu.dot_dimension_numbers<[1], [0], [0], [1], [0, 0, 1, 1], [], []>} : vector<8x32xf32>, vector<32x128xf32>, vector<8x128xf32> -> vector<8x128xf32>
    %c0_3 = arith.constant 0 : index
    %c0_4 = arith.constant 0 : index
    %3 = vector.load %arg3[%c0_3, %c0_4] : memref<1x128xf32, #tpu.memory_space<vmem>>, vector<1x128xf32>
    %4 = vector.broadcast %3 : vector<1x128xf32> to vector<8x128xf32>
    %5 = arith.addf %2, %4 : vector<8x128xf32>
    %cst_5 = arith.constant 5.000000e-01 : f32
    %6 = vector.broadcast %cst_5 : f32 to vector<8x128xf32>
    %7 = arith.mulf %6, %5 : vector<8x128xf32>
    %cst_6 = arith.constant 0.707106769 : f32
    %8 = vector.broadcast %cst_6 : f32 to vector<8x128xf32>
    %9 = arith.mulf %5, %8 : vector<8x128xf32>
    %10 = math.erf %9 : vector<8x128xf32>
    %cst_7 = arith.constant 1.000000e+00 : f32
    %11 = vector.broadcast %cst_7 : f32 to vector<8x128xf32>
    %12 = arith.addf %11, %10 : vector<8x128xf32>
    %13 = arith.mulf %7, %12 : vector<8x128xf32>
    %c0_8 = arith.constant 0 : index
    %c0_9 = arith.constant 0 : index
    %14 = vector.load %arg4[%c0_8, %c0_9] : memref<128x128xf32, #tpu.memory_space<vmem>>, vector<128x128xf32>
    %cst_10 = arith.constant dense<0.000000e+00> : vector<8x128xf32>
    %15 = tpu.matmul %13, %14, %cst_10 {dimension_numbers = #tpu.dot_dimension_numbers<[1], [0], [0], [1], [0, 0, 1, 1], [], []>} : vector<8x128xf32>, vector<128x128xf32>, vector<8x128xf32> -> vector<8x128xf32>
    %c0_11 = arith.constant 0 : index
    %c0_12 = arith.constant 0 : index
    %16 = vector.load %arg5[%c0_11, %c0_12] : memref<1x128xf32, #tpu.memory_space<vmem>>, vector<1x128xf32>
    %17 = vector.broadcast %16 : vector<1x128xf32> to vector<8x128xf32>
    %18 = arith.addf %15, %17 : vector<8x128xf32>
    %cst_13 = arith.constant 5.000000e-01 : f32
    %19 = vector.broadcast %cst_13 : f32 to vector<8x128xf32>
    %20 = arith.mulf %19, %18 : vector<8x128xf32>
    %cst_14 = arith.constant 0.707106769 : f32
    %21 = vector.broadcast %cst_14 : f32 to vector<8x128xf32>
    %22 = arith.mulf %18, %21 : vector<8x128xf32>
    %23 = math.erf %22 : vector<8x128xf32>
    %cst_15 = arith.constant 1.000000e+00 : f32
    %24 = vector.broadcast %cst_15 : f32 to vector<8x128xf32>
    %25 = arith.addf %24, %23 : vector<8x128xf32>
    %26 = arith.mulf %20, %25 : vector<8x128xf32>
    %c0_16 = arith.constant 0 : index
    %c0_17 = arith.constant 0 : index
    %27 = vector.load %arg6[%c0_16, %c0_17] : memref<128x128xf32, #tpu.memory_space<vmem>>, vector<128x128xf32>
    %cst_18 = arith.constant dense<0.000000e+00> : vector<8x128xf32>
    %28 = tpu.matmul %26, %27, %cst_18 {dimension_numbers = #tpu.dot_dimension_numbers<[1], [0], [0], [1], [0, 0, 1, 1], [], []>} : vector<8x128xf32>, vector<128x128xf32>, vector<8x128xf32> -> vector<8x128xf32>
    %c0_19 = arith.constant 0 : index
    %c0_20 = arith.constant 0 : index
    %29 = vector.load %arg7[%c0_19, %c0_20] : memref<1x128xf32, #tpu.memory_space<vmem>>, vector<1x128xf32>
    %30 = vector.broadcast %29 : vector<1x128xf32> to vector<8x128xf32>
    %31 = arith.addf %28, %30 : vector<8x128xf32>
    %c0_21 = arith.constant 0 : index
    %c0_22 = arith.constant 0 : index
    %32 = vector.load %arg8[%c0_21, %c0_22] : memref<8x128xf32, #tpu.memory_space<vmem>>, vector<8x128xf32>
    tpu.vector_store %arg8[%c0_21, %c0_22], %31 {strides = array<i32>} : memref<8x128xf32, #tpu.memory_space<vmem>>, vector<8x128xf32>,
    return
  }
  func.func @transform_0(%arg0: i32) -> (i32, i32) {
    %c0_i32 = arith.constant 0 : i32
    %c0_i32_0 = arith.constant 0 : i32
    return %arg0, %c0_i32 : i32, i32
  }
  func.func @transform_1(%arg0: i32) -> (i32, i32) {
    %c0_i32 = arith.constant 0 : i32
    %c0_i32_0 = arith.constant 0 : i32
    %c0_i32_1 = arith.constant 0 : i32
    return %c0_i32, %c0_i32_0 : i32, i32
  }
  func.func @transform_2(%arg0: i32) -> (i32, i32) {
    %c0_i32 = arith.constant 0 : i32
    %c0_i32_0 = arith.constant 0 : i32
    %c0_i32_1 = arith.constant 0 : i32
    return %c0_i32, %c0_i32_0 : i32, i32
  }
  func.func @transform_3(%arg0: i32) -> (i32, i32) {
    %c0_i32 = arith.constant 0 : i32
    %c0_i32_0 = arith.constant 0 : i32
    %c0_i32_1 = arith.constant 0 : i32
    return %c0_i32, %c0_i32_0 : i32, i32
  }
  func.func @transform_4(%arg0: i32) -> (i32, i32) {
    %c0_i32 = arith.constant 0 : i32
    %c0_i32_0 = arith.constant 0 : i32
    %c0_i32_1 = arith.constant 0 : i32
    return %c0_i32, %c0_i32_0 : i32, i32
  }
  func.func @transform_5(%arg0: i32) -> (i32, i32) {
    %c0_i32 = arith.constant 0 : i32
    %c0_i32_0 = arith.constant 0 : i32
    %c0_i32_1 = arith.constant 0 : i32
    return %c0_i32, %c0_i32_0 : i32, i32
  }
  func.func @transform_6(%arg0: i32) -> (i32, i32) {
    %c0_i32 = arith.constant 0 : i32
    %c0_i32_0 = arith.constant 0 : i32
    %c0_i32_1 = arith.constant 0 : i32
    return %c0_i32, %c0_i32_0 : i32, i32
  }
  func.func @transform_7(%arg0: i32) -> (i32, i32) {
    %c0_i32 = arith.constant 0 : i32
    %c0_i32_0 = arith.constant 0 : i32
    return %arg0, %c0_i32 : i32, i32
  }
}

</mosaic_0001>

<bundles_post_ra>
// kernel: value_network.1
= control target key start
LH: loop header
LB: loop body
LE: loop exit
PB: predicated region body
PF: predicated region fallthrough
CT: control target
= control target key end

     0   :  { %v498_v0 = vmov 0.0|0.0   ;;  %vm499_vm0 = vmmov 0   ;;  %v500_v4 = vmov 0.0   ;;  %vm38_vm1 = vcmask 261120   ;;  %s685_s1 = inlined_call_operand.vmem [shape: f32[32,128], index: 1, kind: input, shape index: {}]   ;;  %s686_s3 = inlined_call_operand.vmem [shape: f32[128,128], index: 3, kind: input, shape index: {}]   ;;  %s687_s0 = inlined_call_operand.vmem [shape: f32[8,32], index: 0, kind: input, shape index: {}]   ;;  %s688_s5 = inlined_call_operand.vmem [shape: f32[128,128], index: 5, kind: input, shape index: {}]   ;;  %s689_s2 = inlined_call_operand.vmem [shape: f32[1,128], index: 2, kind: input, shape index: {}]   ;;  %s690_s4 = inlined_call_operand.vmem [shape: f32[1,128], index: 4, kind: input, shape index: {}]   ;;  %s691_s6 = inlined_call_operand.vmem [shape: f32[1,128], index: 6, kind: input, shape index: {}]   ;;  %s692_s7 = inlined_call_operand.vmem [shape: f32[8,128], index: 7, kind: output, shape index: {}]  }
   0x1   :  { %437 = vmatprep.subr.bf16.mxu0 %v498_v0  ;;  %v27_v1 = vld [vmem:[%s685_s1] sm:$0xff]  ;;  %v28_v2 = vld [vmem:[%s685_s1 + $0x8] sm:$0xff]  ;;  %v29_v3 = vld [vmem:[%s685_s1 + $0x10] sm:$0xff]  ;;  %364 = vmatprep.mubr.msk.f32.mxu0 %vm499_vm0, %v500_v4 }
   0x2   :  { %v438_v5 = vpack.c.bf16 %v28_v2, %v27_v1  ;;  %v30_v6 = vld [vmem:[%s685_s1 + $0x18] sm:$0xff]  ;;  %443 = vmatprep.subr.bf16.mxu1 %v498_v0  ;;  %v117_v7 = vld [vmem:[%s686_s3] sm:$0xff]  ;;  %399 = vmatprep.mubr.msk.f32.mxu1 %vm499_vm0, %v500_v4  ;;  %v118_v8 = vld [vmem:[%s686_s3 + $0x8] sm:$0xff] }
   0x3   :  { %v119_v9 = vld [vmem:[%s686_s3 + $0x10] sm:$0xff]  ;;  %v120_v10 = vld [vmem:[%s686_s3 + $0x18] sm:$0xff]  ;;  %v441_v11 = vpack.c.bf16 %v30_v6, %v29_v3  ;;  %v444_v12 = vpack.c.bf16 %v118_v8, %v117_v7  ;;  %v121_v14 = vld [vmem:[%s686_s3 + $0x20] sm:$0xff] }
   0x4   :  { %439 = vmatpush3.bf16.msra.mxu0 %v438_v5  ;;  %v447_v13 = vpack.c.bf16 %v120_v10, %v119_v9  ;;  %v122_v15 = vld [vmem:[%s686_s3 + $0x28] sm:$0xff]  ;;  %v26_v16 = vld [vmem:[%s687_s0] sm:$0xff]  ;;  %v123_v18 = vld [vmem:[%s686_s3 + $0x30] sm:$0xff] }
   0x5   :  { %440 = vmatprep.subr.bf16.mxu0 %v498_v0  ;;  %445 = vmatpush3.bf16.msra.mxu1 %v444_v12  ;;  %v450_v17 = vpack.c.bf16 %v122_v15, %v121_v14  ;;  %v124_v19 = vld [vmem:[%s686_s3 + $0x38] sm:$0xff]  ;;  %v125_v21 = vld [vmem:[%s686_s3 + $0x40] sm:$0xff]  ;;  %v126_v22 = vld [vmem:[%s686_s3 + $0x48] sm:$0xff] }
   0x6   :  { %446 = vmatprep.subr.bf16.mxu1 %v498_v0  ;;  %v453_v20 = vpack.c.bf16 %v124_v19, %v123_v18  ;;  %v456_v23 = vpack.c.bf16 %v126_v22, %v125_v21  ;;  %v127_v24 = vld [vmem:[%s686_s3 + $0x50] sm:$0xff]  ;;  %v128_v25 = vld [vmem:[%s686_s3 + $0x58] sm:$0xff]  ;;  %v129_v27 = vld [vmem:[%s686_s3 + $0x60] sm:$0xff] }
   0x7   :  { %v459_v26 = vpack.c.bf16 %v128_v25, %v127_v24  ;;  %v130_v28 = vld [vmem:[%s686_s3 + $0x68] sm:$0xff]  ;;  %v131_v30 = vld [vmem:[%s686_s3 + $0x70] sm:$0xff]  ;;  %v132_v31 = vld [vmem:[%s686_s3 + $0x78] sm:$0xff] }
   0x8   :  { %442 = vmatpush3.bf16.msra.mxu0 %v441_v11  ;;  %v462_v29 = vpack.c.bf16 %v130_v28, %v129_v27  ;;  %v465_v32 = vpack.c.bf16 %v132_v31, %v131_v30  ;;  %v215_v33 = vld [vmem:[%s688_s5] sm:$0xff]  ;;  %v216_v34 = vld [vmem:[%s688_s5 + $0x8] sm:$0xff]  ;;  %v217_v35 = vld [vmem:[%s688_s5 + $0x10] sm:$0xff] }
   0x9   :  { %467 = vmatprep.subr.bf16.mxu0 %v498_v0  ;;  %448 = vmatpush3.bf16.msra.mxu1 %v447_v13  ;;  %v468_v36 = vpack.c.bf16 %v216_v34, %v215_v33  ;;  %v218_v37 = vld [vmem:[%s688_s5 + $0x18] sm:$0xff]  ;;  %v219_v39 = vld [vmem:[%s688_s5 + $0x20] sm:$0xff]  ;;  %v220_v40 = vld [vmem:[%s688_s5 + $0x28] sm:$0xff] }
   0xa   :  { %449 = vmatprep.subr.bf16.mxu1 %v498_v0  ;;  %v471_v38 = vpack.c.bf16 %v218_v37, %v217_v35  ;;  %v474_v41 = vpack.c.bf16 %v220_v40, %v219_v39  ;;  %v313_v42 = vld [vmem:[%s689_s2] ss:$0 sm:$0xff]  ;;  %v221_v51 = vld [vmem:[%s688_s5 + $0x30] sm:$0xff]  ;;  %v222_v52 = vld [vmem:[%s688_s5 + $0x38] sm:$0xff] }
   0xb   :  { %365 = vmatmul.mubr.msk.f32.vlgmr.msra.gmra.mrb[0].mxu0 %vm38_vm1, %v26_v16  ;;  %v477_v53 = vpack.c.bf16 %v222_v52, %v221_v51  ;;  %v223_v54 = vld [vmem:[%s688_s5 + $0x40] sm:$0xff]  ;;  %v224_v55 = vld [vmem:[%s688_s5 + $0x48] sm:$0xff]  ;;  %v225_v57 = vld [vmem:[%s688_s5 + $0x50] sm:$0xff] }
   0xc   :  { %434 = vmatprep.mubr.msk.f32.mxu0 %vm499_vm0, %v500_v4  ;;  %469 = vmatpush3.bf16.msra.mxu0 %v468_v36  ;;  %v480_v56 = vpack.c.bf16 %v224_v55, %v223_v54  ;;  %v226_v58 = vld [vmem:[%s688_s5 + $0x58] sm:$0xff]  ;;  %v227_v60 = vld [vmem:[%s688_s5 + $0x60] sm:$0xff]  ;;  %v228_v61 = vld [vmem:[%s688_s5 + $0x68] sm:$0xff] }
   0xd   :  { %451 = vmatpush3.bf16.msra.mxu1 %v450_v17  ;;  %470 = vmatprep.subr.bf16.mxu0 %v498_v0  ;;  %v483_v59 = vpack.c.bf16 %v226_v58, %v225_v57  ;;  %v486_v62 = vpack.c.bf16 %v228_v61, %v227_v60  ;;  %v229_v63 = vld [vmem:[%s688_s5 + $0x70] sm:$0xff]  ;;  %v230_v1 = vld [vmem:[%s688_s5 + $0x78] sm:$0xff]  ;;  %v315_v3 = vld [vmem:[%s690_s4] ss:$0 sm:$0xff] }
   0xe   :  { %452 = vmatprep.subr.bf16.mxu1 %v498_v0  ;;  %v489_v2 = vpack.c.bf16 %v230_v1, %v229_v63  ;;  %v316_v11 = vld [vmem:[%s691_s6] ss:$0 sm:$0xff] }
  0x10   :  { %472 = vmatpush3.bf16.msra.mxu0 %v471_v38 }
  0x11   :  { %454 = vmatpush3.bf16.msra.mxu1 %v453_v20  ;;  %473 = vmatprep.subr.bf16.mxu0 %v498_v0 }
  0x12   :  { %455 = vmatprep.subr.bf16.mxu1 %v498_v0 }
  0x14   :  { %475 = vmatpush3.bf16.msra.mxu0 %v474_v41 }
  0x15   :  { %457 = vmatpush3.bf16.msra.mxu1 %v456_v23  ;;  %476 = vmatprep.subr.bf16.mxu0 %v498_v0 }
  0x16   :  { %458 = vmatprep.subr.bf16.mxu1 %v498_v0 }
  0x18   :  { %478 = vmatpush3.bf16.msra.mxu0 %v477_v53 }
  0x19   :  { %460 = vmatpush3.bf16.msra.mxu1 %v459_v26  ;;  %479 = vmatprep.subr.bf16.mxu0 %v498_v0 }
  0x1a   :  { %461 = vmatprep.subr.bf16.mxu1 %v498_v0 }
  0x1c   :  { %481 = vmatpush3.bf16.msra.mxu0 %v480_v56 }
  0x1d   :  { %463 = vmatpush3.bf16.msra.mxu1 %v462_v29  ;;  %482 = vmatprep.subr.bf16.mxu0 %v498_v0 }
  0x1e   :  { %464 = vmatprep.subr.bf16.mxu1 %v498_v0 }
  0x20   :  { %484 = vmatpush3.bf16.msra.mxu0 %v483_v59 }
  0x21   :  { %466 = vmatpush3.bf16.msra.mxu1 %v465_v32  ;;  %485 = vmatprep.subr.bf16.mxu0 %v498_v0 }
  0x24   :  { %487 = vmatpush3.bf16.msra.mxu0 %v486_v62 }
  0x25   :  { %488 = vmatprep.subr.bf16.mxu0 %v498_v0 }
  0x28   :  { %490 = vmatpush3.bf16.msra.mxu0 %v489_v2 }
  0xde   :  { %v108_v43 = vpop.f32.mrb[0].mxu0 }
  0xdf   :  { %v109_v44 = vadd.f32 %v313_v42, %v108_v43  ;;  %v366_v45 = vpop.f32.mrb[1].mxu0 }
  0xe1   :  { %v113_v46 = vmul.f32 0.70710677, %v109_v44  ;;  %v112_v48 = vmul.f32 0.5, %v109_v44 }
  0xe3   :  { %494 = verf.f32 %v113_v46 }
  0xed   :  { %v495_v47 = vpop.eup %494 }
  0xee   :  { %v115_v49 = vadd.f32 1.0, %v495_v47 }
  0xf0   :  { %v116_v50 = vmul.f32 %v115_v49, %v112_v48 }
  0xf2   :  { %400 = vmatmul.mubr.f32.vlgmr.msra.gmra.mrb[0].mxu1 %v116_v50 }
 0x1c5   :  { %v206_v4 = vpop.f32.mrb[0].mxu1 }
 0x1c6   :  { %v207_v5 = vadd.f32 %v315_v3, %v206_v4  ;;  %v401_v6 = vpop.f32.mrb[1].mxu1 }
 0x1c8   :  { %v211_v7 = vmul.f32 0.70710677, %v207_v5  ;;  %v210_v8 = vmul.f32 0.5, %v207_v5 }
 0x1ca   :  { %496 = verf.f32 %v211_v7 }
 0x1d4   :  { %v497_v0 = vpop.eup %496 }
 0x1d5   :  { %v213_v9 = vadd.f32 1.0, %v497_v0 }
 0x1d7   :  { %v214_v10 = vmul.f32 %v213_v9, %v210_v8 }
 0x1d9   :  { %435 = vmatmul.mubr.f32.vlgmr.msra.gmra.mrb[2].mxu0 %v214_v10 }
 0x2ac   :  { %v304_v12 = vpop.f32.mrb[2].mxu0 }
 0x2ad   :  { %v305_v13 = vadd.f32 %v316_v11, %v304_v12  ;;  %v436_v14 = vpop.f32.mrb[3].mxu0 }
 0x2af   :  { %308 = vst [vmem:[%s692_s7] sm:$0xff] %v305_v13 }

</bundles_post_ra>
